<compile_context>
chip_gen: v7x
topology: tpu7x:2x2x1
jax: 0.10.0
libtpu: 0.0.40
codegen_flags: <defaults>
</compile_context>

<pallas_src>
import functools

import jax
import jax.numpy as jnp
from jax.experimental import pallas as pl
from jax.experimental.pallas import tpu as pltpu


def _cdiv(a, b):
    return (a + b - 1) // b


def _round_up(x, m):
    return ((x + m - 1) // m) * m


def _device_kind():
    try:
        return jax.devices()[0].device_kind.lower()
    except Exception:
        return ""


def _is_v7(kind):
    return ("7x" in kind) or ("v7" in kind)


def _has_two_cores(kind):
    # v7x: 2 TensorCores / chip; v4 & v5p: megacore (parallel grid axes shard).
    return _is_v7(kind) or ("v4" in kind) or ("v5p" in kind)


def _dice_sums_kernel(logits_ref, label_ref, numer_ref, denom_ref,
                      nacc_ref, dacc_ref, *, p, ignore_lb, hw_total, kk):
    # logits_ref: (1, C, T)    float block   (sample i, HW tile (j, k))
    # label_ref : (1, 1, T)    narrow-int block
    # numer_ref : (1, 1, C, 1) float32 output block (per sample / HW split)
    # denom_ref : (1, 1, C, 1) float32 output block
    # nacc_ref, dacc_ref : (C, T) float32 VMEM accumulators
    j = pl.program_id(1)          # HW split index (parallel)
    k = pl.program_id(2)          # tile index within split (reduction)

    @pl.when(k == 0)
    def _():
        nacc_ref[...] = jnp.zeros_like(nacc_ref)
        dacc_ref[...] = jnp.zeros_like(dacc_ref)

    logits = logits_ref[0]                           # (C, T)
    c, t = logits.shape
    label = label_ref[0].astype(jnp.int32)           # (1, T) widened in-register

    # Lane-only (1, T) masks: ragged tail / clamped-duplicate tiles + ignore label.
    base = (j * kk + k) * t
    col = jax.lax.broadcasted_iota(jnp.int32, (1, t), 1)
    in_bounds = (base + col) < hw_total                              # (1, T)
    valid = (label != ignore_lb) & in_bounds                         # (1, T)
    lbl = jnp.where(valid, label, -1)                # invalid lanes match no class

    probs = jax.nn.sigmoid(logits.astype(jnp.float32))               # EUP, (C, T)
    ch = jax.lax.broadcasted_iota(jnp.int32, (c, t), 0)              # class-id rows
    onehot = ch == lbl                                               # (C, T) bool

    # numer term: select (NaN-safe on padded lanes), no float multiply.
    nacc_ref[...] += jnp.where(onehot, probs, 0.0)

    if p == 1:
        probs_p = probs
    else:
        p_f = float(p)
        if p_f.is_integer() and p_f > 1:
            probs_p = probs
            for _ in range(int(p_f) - 1):            # repeated multiply: VPU, not EUP pow
                probs_p = probs_p * probs
        else:
            probs_p = probs ** p
    # denom term: onehot**p == onehot for 0/1 values and p > 0; mask probs_p with the
    # lane mask via a select so padded-lane NaNs cannot poison the accumulator.
    dacc_ref[...] += jnp.where(in_bounds, probs_p, 0.0) + onehot.astype(jnp.float32)

    # Single cross-lane (XLU) reduce per (sample, split), at the last tile.
    @pl.when(k == pl.num_programs(2) - 1)
    def _():
        numer_ref[0, 0] = jnp.sum(nacc_ref[...], axis=1, keepdims=True)   # (C, 1)
        denom_ref[0, 0] = jnp.sum(dacc_ref[...], axis=1, keepdims=True)   # (C, 1)


def _choose_block_hw(hw, c, logits_itemsize, label_itemsize, vmem_target_bytes):
    """Largest lane-dense HW tile whose per-step VMEM stays under vmem_target_bytes."""
    # Bytes that scale with T per grid step:
    #   2x double-buffered logits block + 2x label block + 2x (C, T) f32 accumulators.
    per_lane = 2 * c * logits_itemsize + 2 * label_itemsize + 2 * c * 4
    t = (4 * 1024 * 1024) // max(1, c * logits_itemsize)   # ~4 MiB of logits per block
    t = min(t, 32768)                                       # lane cap
    t = min(t, vmem_target_bytes // max(1, per_lane))       # v7x-safe accounting
    t = max(128, (t // 128) * 128)                          # multiple of 128 lanes
    t = min(t, _round_up(hw, 128))
    return int(t)


def _auto_hw_splits(n, nblk, kind):
    # Splitting HW only helps when two cores exist and the N axis can't feed both.
    if _has_two_cores(kind) and n < 2 and nblk >= 2 and nblk % 2 == 0:
        return 2
    return 1


def generalized_soft_dice_loss(logits, label, *, p=1, smooth=1.0,
                               reduction="mean", weight=None, ignore_lb=255,
                               block_hw=None, hw_splits=None):
    """logits: (N, C, H, W) float (f32/bf16); label: (N, H, W) int (narrow ok)."""
    n, c, h, w = logits.shape
    hw = h * w

    if not jnp.issubdtype(logits.dtype, jnp.floating):
        logits = logits.astype(jnp.float32)
    logits_flat = logits.reshape(n, c, hw)                 # free reshape, NO transpose

    # Keep narrow integer labels narrow in HBM; widen in-register inside the kernel.
    if label.dtype.name not in ("int8", "uint8", "int16", "int32"):
        label = label.astype(jnp.int32)
    label_flat = label.reshape(n, 1, hw)                   # lane-dense labels

    kind = _device_kind()
    v7 = _is_v7(kind)
    vmem_limit = (32 if v7 else 64) * 1024 * 1024          # scoped VMEM request
    vmem_target = (24 if v7 else 48) * 1024 * 1024         # per-step budget (headroom)

    if block_hw is None:
        block_hw = _choose_block_hw(hw, c, logits_flat.dtype.itemsize,
                                    label_flat.dtype.itemsize, vmem_target)
    t = int(block_hw)
    nblk = _cdiv(hw, t)                                     # total HW tiles

    if hw_splits is None:
        hw_splits = _auto_hw_splits(n, nblk, kind)
    s = max(1, min(int(hw_splits), nblk))                   # parallel HW splits
    kk = _cdiv(nblk, s)                                     # tiles per split

    def in_map(i, j, k):
        # Clamp so an uneven split never requests a fully out-of-range block;
        # such duplicated tiles are masked to zero in-kernel via `in_bounds`.
        return (i, 0, jnp.minimum(j * kk + k, nblk - 1))

    def out_map(i, j, k):
        return (i, j, 0, 0)

    kernel = functools.partial(_dice_sums_kernel, p=p, ignore_lb=ignore_lb,
                               hw_total=hw, kk=kk)

    numer, denom = pl.pallas_call(
        kernel,
        out_shape=(
            jax.ShapeDtypeStruct((n, s, c, 1), jnp.float32),
            jax.ShapeDtypeStruct((n, s, c, 1), jnp.float32),
        ),
        grid_spec=pltpu.PrefetchScalarGridSpec(
            num_scalar_prefetch=0,
            grid=(n, s, kk),
            in_specs=[
                pl.BlockSpec((1, c, t), in_map),
                pl.BlockSpec((1, 1, t), in_map),
            ],
            out_specs=[
                pl.BlockSpec((1, 1, c, 1), out_map),
                pl.BlockSpec((1, 1, c, 1), out_map),
            ],
            scratch_shapes=[
                pltpu.VMEM((c, t), jnp.float32),
                pltpu.VMEM((c, t), jnp.float32),
            ],
        ),
        compiler_params=pltpu.CompilerParams(
            dimension_semantics=("parallel", "parallel", "arbitrary"),
            vmem_limit_bytes=int(vmem_limit),
        ),
    )(logits_flat, label_flat)

    # Tiny per-sample combine stays in plain JAX (matches reference epilogue).
    numer = jnp.sum(numer[..., 0], axis=1)    # (N, C): combine HW splits
    denom = jnp.sum(denom[..., 0], axis=1)

    if weight is not None:
        wv = jnp.asarray(weight, dtype=jnp.float32).reshape(1, -1)
        numer = numer * wv
        denom = denom * wv

    numer_s = jnp.sum(numer, axis=1)          # (N,)
    denom_s = jnp.sum(denom, axis=1)          # (N,)
    loss = 1.0 - (2.0 * numer_s + smooth) / (denom_s + smooth)
    if reduction == "mean":
        loss = jnp.mean(loss)
    # (Like the PyTorch reference, any other `reduction` returns the per-sample vector.)
    return loss


def _reference_loss(logits, label, *, p=1, smooth=1.0, reduction="mean",
                    weight=None, ignore_lb=255):
    """Pure-JAX reference mirroring the PyTorch forward, for verification."""
    logits = logits.astype(jnp.float32)
    n, c, h, w = logits.shape
    ignore = label == ignore_lb
    lbl = jnp.where(ignore, 0, label).astype(jnp.int32)
    onehot = jax.nn.one_hot(lbl, c, axis=1, dtype=jnp.float32)       # (N, C, H, W)
    onehot = onehot * (~ignore)[:, None, :, :].astype(jnp.float32)
    probs = jax.nn.sigmoid(logits)
    numer = jnp.sum(probs * onehot, axis=(2, 3))
    denom = jnp.sum(probs ** p + onehot ** p, axis=(2, 3))
    if weight is not None:
        wv = jnp.asarray(weight, jnp.float32).reshape(1, -1)
        numer = numer * wv
        denom = denom * wv
    numer = jnp.sum(numer, axis=1)
    denom = jnp.sum(denom, axis=1)
    loss = 1.0 - (2.0 * numer + smooth) / (denom + smooth)
    if reduction == "mean":
        loss = jnp.mean(loss)
    return loss


if __name__ == "__main__":
    key = jax.random.PRNGKey(0)
    k1, k2, k3 = jax.random.split(key, 3)

    # Case 1: canonical small shape, f32 logits, int32 labels with ignore pixels.
    # block_hw=128 -> 2 tiles -> exercises the explicit 2-way parallel HW split.
    N, C, H, W = 2, 4, 16, 16
    logits = jax.random.normal(k1, (N, C, H, W), dtype=jnp.float32)
    label = jax.random.randint(k2, (N, H, W), 0, C, dtype=jnp.int32)
    ignore_mask = jax.random.bernoulli(k3, p=0.1, shape=(N, H, W))
    label = jnp.where(ignore_mask, 255, label)

    loss = jax.block_until_ready(
        generalized_soft_dice_loss(logits, label, p=1, smooth=1.0,
                                   reduction="mean", weight=None,
                                   ignore_lb=255, block_hw=128, hw_splits=2))
    ref = jax.block_until_ready(
        _reference_loss(logits, label, p=1, smooth=1.0, ignore_lb=255))
    assert jnp.allclose(loss, ref, atol=1e-5, rtol=1e-5), (loss, ref)

    # Case 2: bf16 logits (half HBM traffic) + uint8 labels (narrow pass-through),
    # ragged HW tail (480 % 128 != 0), multi-tile accumulation per split, p=2
    # (repeated-multiply path), per-class weights.
    k4, k5, k6 = jax.random.split(k3, 3)
    N2, C2, H2, W2 = 1, 3, 24, 20
    logits2 = jax.random.normal(k4, (N2, C2, H2, W2), dtype=jnp.float32
                                ).astype(jnp.bfloat16)
    label2 = jax.random.randint(k5, (N2, H2, W2), 0, C2, dtype=jnp.int32)
    label2 = jnp.where(jax.random.bernoulli(k6, p=0.15, shape=(N2, H2, W2)),
                       255, label2).astype(jnp.uint8)
    wgt = [0.5, 1.0, 2.0]
    loss2 = jax.block_until_ready(
        generalized_soft_dice_loss(logits2, label2, p=2, smooth=1.0,
                                   reduction="mean", weight=wgt,
                                   ignore_lb=255, block_hw=128, hw_splits=2))
    ref2 = jax.block_until_ready(
        _reference_loss(logits2.astype(jnp.float32), label2.astype(jnp.int32),
                        p=2, smooth=1.0, weight=wgt, ignore_lb=255))
    assert jnp.allclose(loss2, ref2, atol=1e-5, rtol=1e-4), (loss2, ref2)

    # Case 3: fully automatic tile-size / hw_splits / vmem selection path.
    k7, k8, k9 = jax.random.split(k6, 3)
    N3, C3, H3, W3 = 2, 4, 32, 32
    logits3 = jax.random.normal(k7, (N3, C3, H3, W3), dtype=jnp.float32)
    label3 = jax.random.randint(k8, (N3, H3, W3), 0, C3, dtype=jnp.int32)
    label3 = jnp.where(jax.random.bernoulli(k9, p=0.1, shape=(N3, H3, W3)),
                       255, label3)
    loss3 = jax.block_until_ready(
        generalized_soft_dice_loss(logits3, label3, p=1, smooth=1.0,
                                   reduction="mean", ignore_lb=255))
    ref3 = jax.block_until_ready(
        _reference_loss(logits3, label3, p=1, smooth=1.0, ignore_lb=255))
    assert jnp.allclose(loss3, ref3, atol=1e-5, rtol=1e-5), (loss3, ref3)

    print("KERNEL_OK")
</pallas_src>

<mosaic_0001>
module attributes {stable_mosaic.version = 11 : i64} {
  func.func @_dice_sums_kernel(%arg0: i32, %arg1: i32, %arg2: i32, %arg3: memref<1x4x128xf32, #tpu.memory_space<vmem>>, %arg4: memref<1x1x128xi32, #tpu.memory_space<vmem>>, %arg5: memref<1x1x4x1xf32, #tpu.memory_space<vmem>>, %arg6: memref<1x1x4x1xf32, #tpu.memory_space<vmem>>, %arg7: memref<4x128xf32, #tpu.memory_space<vmem>>, %arg8: memref<4x128xf32, #tpu.memory_space<vmem>>) attributes {dimension_semantics = [#tpu.dimension_semantics<parallel>, #tpu.dimension_semantics<parallel>, #tpu.dimension_semantics<arbitrary>], iteration_bounds = array<i64: 2, 2, 1>, scalar_prefetch = 0 : i64, scratch_operands = 2 : i64, tpu.core_type = #tpu.core_type<tc>, window_params = [{transform_indices = @transform_0, window_bounds = array<i64: 1, 4, 128>}, {transform_indices = @transform_1, window_bounds = array<i64: 1, 1, 128>}, {transform_indices = @transform_2, window_bounds = array<i64: 1, 1, 4, 1>}, {transform_indices = @transform_3, window_bounds = array<i64: 1, 1, 4, 1>}]} {
    %c0_i32 = arith.constant 0 : i32
    %0 = arith.cmpi eq, %arg2, %c0_i32 : i32
    %1 = arith.extui %0 : i1 to i32
    %c0_i32_0 = arith.constant 0 : i32
    %2 = arith.cmpi ne, %1, %c0_i32_0 : i32
    scf.if %2 {
      %cst_18 = arith.constant 0.000000e+00 : f32
      %46 = vector.broadcast %cst_18 : f32 to vector<4x128xf32>
      %c0_19 = arith.constant 0 : index
      %c0_20 = arith.constant 0 : index
      %47 = vector.load %arg7[%c0_19, %c0_20] : memref<4x128xf32, #tpu.memory_space<vmem>>, vector<4x128xf32>
      tpu.vector_store %arg7[%c0_19, %c0_20], %46 {strides = array<i32>} : memref<4x128xf32, #tpu.memory_space<vmem>>, vector<4x128xf32>,
      %cst_21 = arith.constant 0.000000e+00 : f32
      %48 = vector.broadcast %cst_21 : f32 to vector<4x128xf32>
      %c0_22 = arith.constant 0 : index
      %c0_23 = arith.constant 0 : index
      %49 = vector.load %arg8[%c0_22, %c0_23] : memref<4x128xf32, #tpu.memory_space<vmem>>, vector<4x128xf32>
      tpu.vector_store %arg8[%c0_22, %c0_23], %48 {strides = array<i32>} : memref<4x128xf32, #tpu.memory_space<vmem>>, vector<4x128xf32>,
    } else {
    }
    %c0 = arith.constant 0 : index
    %c0_1 = arith.constant 0 : index
    %c0_2 = arith.constant 0 : index
    %3 = vector.load %arg3[%c0, %c0_1, %c0_2] : memref<1x4x128xf32, #tpu.memory_space<vmem>>, vector<1x4x128xf32>
    %4 = vector.shape_cast %3 : vector<1x4x128xf32> to vector<4x128xf32>
    %c0_3 = arith.constant 0 : index
    %c0_4 = arith.constant 0 : index
    %c0_5 = arith.constant 0 : index
    %5 = vector.load %arg4[%c0_3, %c0_4, %c0_5] : memref<1x1x128xi32, #tpu.memory_space<vmem>>, vector<1x1x128xi32>
    %6 = vector.shape_cast %5 : vector<1x1x128xi32> to vector<1x128xi32>
    %c1_i32 = arith.constant 1 : i32
    %7 = arith.muli %arg1, %c1_i32 : i32
    %8 = arith.addi %7, %arg2 : i32
    %c128_i32 = arith.constant 128 : i32
    %9 = arith.muli %8, %c128_i32 : i32
    %10 = tpu.iota {dimensions = array<i32: 1>} : vector<1x128xi32>
    %11 = vector.broadcast %9 : i32 to vector<1x128xi32>
    %12 = arith.addi %11, %10 : vector<1x128xi32>
    %c256_i32 = arith.constant 256 : i32
    %13 = vector.broadcast %c256_i32 : i32 to vector<1x128xi32>
    %14 = arith.cmpi slt, %12, %13 : vector<1x128xi32>
    %c255_i32 = arith.constant 255 : i32
    %15 = vector.broadcast %c255_i32 : i32 to vector<1x128xi32>
    %16 = arith.cmpi ne, %6, %15 : vector<1x128xi32>
    %17 = arith.andi %16, %14 : vector<1x128xi1>
    %c-1_i32 = arith.constant -1 : i32
    %18 = vector.broadcast %c-1_i32 : i32 to vector<1x128xi32>
    %19 = arith.select %17, %6, %18 : vector<1x128xi1>, vector<1x128xi32>
    %20 = arith.negf %4 : vector<4x128xf32>
    %21 = math.exp %20 : vector<4x128xf32>
    %cst = arith.constant 1.000000e+00 : f32
    %22 = vector.broadcast %cst : f32 to vector<4x128xf32>
    %23 = arith.addf %22, %21 : vector<4x128xf32>
    %24 = arith.divf %22, %23 : vector<4x128xf32>
    %25 = tpu.iota {dimensions = array<i32: 0>} : vector<4x128xi32>
    %26 = vector.broadcast %19 : vector<1x128xi32> to vector<4x128xi32>
    %27 = arith.cmpi eq, %25, %26 : vector<4x128xi32>
    %c0_6 = arith.constant 0 : index
    %c0_7 = arith.constant 0 : index
    %28 = vector.load %arg7[%c0_6, %c0_7] : memref<4x128xf32, #tpu.memory_space<vmem>>, vector<4x128xf32>
    %cst_8 = arith.constant 0.000000e+00 : f32
    %29 = vector.broadcast %cst_8 : f32 to vector<4x128xf32>
    %30 = arith.select %27, %24, %29 : vector<4x128xi1>, vector<4x128xf32>
    %31 = arith.addf %28, %30 : vector<4x128xf32>
    %c0_9 = arith.constant 0 : index
    %c0_10 = arith.constant 0 : index
    %32 = vector.load %arg7[%c0_9, %c0_10] : memref<4x128xf32, #tpu.memory_space<vmem>>, vector<4x128xf32>
    tpu.vector_store %arg7[%c0_9, %c0_10], %31 {strides = array<i32>} : memref<4x128xf32, #tpu.memory_space<vmem>>, vector<4x128xf32>,
    %c0_11 = arith.constant 0 : index
    %c0_12 = arith.constant 0 : index
    %33 = vector.load %arg8[%c0_11, %c0_12] : memref<4x128xf32, #tpu.memory_space<vmem>>, vector<4x128xf32>
    %cst_13 = arith.constant 0.000000e+00 : f32
    %34 = vector.shape_cast %14 : vector<1x128xi1> to vector<1x128xi1>
    %35 = vector.broadcast %34 : vector<1x128xi1> to vector<4x128xi1>
    %36 = vector.broadcast %cst_13 : f32 to vector<4x128xf32>
    %37 = arith.select %35, %24, %36 : vector<4x128xi1>, vector<4x128xf32>
    %38 = arith.extui %27 : vector<4x128xi1> to vector<4x128xi32>
    %39 = arith.sitofp %38 : vector<4x128xi32> to vector<4x128xf32>
    %40 = arith.addf %37, %39 : vector<4x128xf32>
    %41 = arith.addf %33, %40 : vector<4x128xf32>
    %c0_14 = arith.constant 0 : index
    %c0_15 = arith.constant 0 : index
    %42 = vector.load %arg8[%c0_14, %c0_15] : memref<4x128xf32, #tpu.memory_space<vmem>>, vector<4x128xf32>
    tpu.vector_store %arg8[%c0_14, %c0_15], %41 {strides = array<i32>} : memref<4x128xf32, #tpu.memory_space<vmem>>, vector<4x128xf32>,
    %c0_i32_16 = arith.constant 0 : i32
    %43 = arith.cmpi eq, %arg2, %c0_i32_16 : i32
    %44 = arith.extui %43 : i1 to i32
    %c0_i32_17 = arith.constant 0 : i32
    %45 = arith.cmpi ne, %44, %c0_i32_17 : i32
    scf.if %45 {
      %c0_18 = arith.constant 0 : index
      %c0_19 = arith.constant 0 : index
      %46 = vector.load %arg7[%c0_18, %c0_19] : memref<4x128xf32, #tpu.memory_space<vmem>>, vector<4x128xf32>
      %cst_20 = arith.constant dense<0.000000e+00> : vector<4xf32>
      %47 = vector.multi_reduction <add>, %46, %cst_20 [1] : vector<4x128xf32> to vector<4xf32>
      %48 = vector.shape_cast %47 : vector<4xf32> to vector<4x1xf32>
      %c0_21 = arith.constant 0 : index
      %c0_22 = arith.constant 0 : index
      %c0_23 = arith.constant 0 : index
      %c0_24 = arith.constant 0 : index
      %49 = vector.load %arg5[%c0_21, %c0_22, %c0_23, %c0_24] : memref<1x1x4x1xf32, #tpu.memory_space<vmem>>, vector<1x1x4x1xf32>
      %50 = vector.shape_cast %49 : vector<1x1x4x1xf32> to vector<4x1xf32>
      %51 = vector.shape_cast %48 : vector<4x1xf32> to vector<1x1x4x1xf32>
      tpu.vector_store %arg5[%c0_21, %c0_22, %c0_23, %c0_24], %51 {strides = array<i32>} : memref<1x1x4x1xf32, #tpu.memory_space<vmem>>, vector<1x1x4x1xf32>,
      %c0_25 = arith.constant 0 : index
      %c0_26 = arith.constant 0 : index
      %52 = vector.load %arg8[%c0_25, %c0_26] : memref<4x128xf32, #tpu.memory_space<vmem>>, vector<4x128xf32>
      %cst_27 = arith.constant dense<0.000000e+00> : vector<4xf32>
      %53 = vector.multi_reduction <add>, %52, %cst_27 [1] : vector<4x128xf32> to vector<4xf32>
      %54 = vector.shape_cast %53 : vector<4xf32> to vector<4x1xf32>
      %c0_28 = arith.constant 0 : index
      %c0_29 = arith.constant 0 : index
      %c0_30 = arith.constant 0 : index
      %c0_31 = arith.constant 0 : index
      %55 = vector.load %arg6[%c0_28, %c0_29, %c0_30, %c0_31] : memref<1x1x4x1xf32, #tpu.memory_space<vmem>>, vector<1x1x4x1xf32>
      %56 = vector.shape_cast %55 : vector<1x1x4x1xf32> to vector<4x1xf32>
      %57 = vector.shape_cast %54 : vector<4x1xf32> to vector<1x1x4x1xf32>
      tpu.vector_store %arg6[%c0_28, %c0_29, %c0_30, %c0_31], %57 {strides = array<i32>} : memref<1x1x4x1xf32, #tpu.memory_space<vmem>>, vector<1x1x4x1xf32>,
    } else {
    }
    return
  }
  func.func @transform_0(%arg0: i32, %arg1: i32, %arg2: i32) -> (i32, i32, i32) {
    %c1_i32 = arith.constant 1 : i32
    %0 = arith.muli %arg1, %c1_i32 : i32
    %1 = arith.addi %0, %arg2 : i32
    %c1_i32_0 = arith.constant 1 : i32
    %2 = arith.minsi %1, %c1_i32_0 : i32
    %c0_i32 = arith.constant 0 : i32
    %c0_i32_1 = arith.constant 0 : i32
    return %arg0, %c0_i32, %2 : i32, i32, i32
  }
  func.func @transform_1(%arg0: i32, %arg1: i32, %arg2: i32) -> (i32, i32, i32) {
    %c1_i32 = arith.constant 1 : i32
    %0 = arith.muli %arg1, %c1_i32 : i32
    %1 = arith.addi %0, %arg2 : i32
    %c1_i32_0 = arith.constant 1 : i32
    %2 = arith.minsi %1, %c1_i32_0 : i32
    %c0_i32 = arith.constant 0 : i32
    %c0_i32_1 = arith.constant 0 : i32
    return %arg0, %c0_i32, %2 : i32, i32, i32
  }
  func.func @transform_2(%arg0: i32, %arg1: i32, %arg2: i32) -> (i32, i32, i32, i32) {
    %c0_i32 = arith.constant 0 : i32
    %c0_i32_0 = arith.constant 0 : i32
    %c0_i32_1 = arith.constant 0 : i32
    return %arg0, %arg1, %c0_i32, %c0_i32_0 : i32, i32, i32, i32
  }
  func.func @transform_3(%arg0: i32, %arg1: i32, %arg2: i32) -> (i32, i32, i32, i32) {
    %c0_i32 = arith.constant 0 : i32
    %c0_i32_0 = arith.constant 0 : i32
    %c0_i32_1 = arith.constant 0 : i32
    return %arg0, %arg1, %c0_i32, %c0_i32_0 : i32, i32, i32, i32
  }
}

</mosaic_0001>

<bundles_post_ra>
// kernel: tpu_custom_call.1
= control target key start
LH: loop header
LB: loop body
LE: loop exit
PB: predicated region body
PF: predicated region fallthrough
CT: control target
= control target key end

     0   :  { %s1241_s0 = inlined_call_operand.hbm [shape: f32[2,4,256], index: 0, kind: input, shape index: {}]   ;;  %s1242_s1 = inlined_call_operand.hbm [shape: s32[2,1,256], index: 1, kind: input, shape index: {}]   ;;  %s1243_s2 = inlined_call_operand.hbm [shape: f32[2,2,4,1], index: 2, kind: output, shape index: {0}]   ;;  %s1244_s3 = inlined_call_operand.hbm [shape: f32[2,2,4,1], index: 3, kind: output, shape index: {1}]  }
   0x1   :  { %1250 = sst [smem:[#allocation19_spill]] %s1241_s0 }
   0x2   :  { %9 = vsyncpa [#allocation5], 0 }
   0x3   :  { %11 = vsyncpa [#allocation5 + $0x1], 0 }
   0x4   :  { %12 = vsyncpa [#allocation8], 0 }
   0x5   :  { %14 = vsyncpa [#allocation8 + $0x1], 0 }
   0x6   :  { %15 = vsyncpa [#allocation6], 0 }
   0x7   :  { %17 = vsyncpa [#allocation6 + $0x1], 0 }
   0x8   :  { %18 = vsyncpa [#allocation11], 0 }
   0x9   :  { %20 = vsyncpa [#allocation11 + $0x1], 0  ;;  %s911_s12 = smov 0   ;;  %s913_s13 = smov 0  }
   0xa   :  { %s915_s14 = smov 0   ;;  %s917_s15 = smov 0  }
   0xb   :  { %s919_s16 = smov 0   ;;  %s921_s17 = smov 0  }
   0xc   :  { %s923_s18 = smov 0   ;;  %s925_s19 = smov 0  }
   0xd   :  { %s927_s20 = smov 0   ;;  %s929_s21 = smov 0  }
   0xe   :  { %s931_s22 = smov 0  }
   0xf LB: > { %1251 = sst [smem:[#allocation16_spill]] %s880_s21  ;;  %s525_s23 = sadd.s32 4294967295, %s884_s22   ;;  %s884_s22 = sphi %s931_s22, %s26_s22   ;;  %s880_s21 = sphi %s929_s21, %s1269_s21   ;;  %s876_s20 = sphi %s927_s20, %s1277_s20   ;;  %s872_s19 = sphi %s925_s19, %s1267_s19   ;;  %s868_s18 = sphi %s923_s18, %s1276_s18   ;;  %s864_s17 = sphi %s921_s17, %s1275_s17   ;;  %s860_s16 = sphi %s919_s16, %s1274_s16   ;;  %s856_s15 = sphi %s917_s15, %s1273_s15   ;;  %s852_s14 = sphi %s915_s14, %s1272_s14   ;;  %s848_s13 = sphi %s913_s13, %s1271_s13   ;;  %s844_s12 = sphi %s911_s12, %s1270_s12  }
  0x10   : > { %s526_s24 = sadd.s32 4294967294, %s884_s22   ;;  %s41_s25 = sadd.s32 1, %s876_s20 }
  0x11   : > { %s45_s26 = sadd.s32 1, %s880_s21  ;;  %p43_p0 = scmp.ge.s32.totalorder %s41_s25, 2 }
  0x12   : > { %p50_p1 = scmp.lt.s32.totalorder %s876_s20, 1  ;;  %s60_s27 = sadd.s32 1, %s864_s17 }
  0x13   : > { %p67_p2 = scmp.ne.s32.totalorder %s864_s17, %s860_s16  ;;  %s1279_s25 = smov (%p43_p0, %s41_s25), 0 }
  0x14   : > { %1252 = sst [smem:[#allocation17_spill]] %s1279_s25  ;;  %s1281_s26 = smov (!%p43_p0, %s45_s26), %s880_s21 }
  0x15   : > { %s978_s28 = scalar_select %p50_p1, %s876_s20, 1 }
  0x16   : > { %p47_p3 = scmp.ge.s32.totalorder %s1281_s26, 2  ;;  %p53_p4 = scmp.lt.s32.totalorder %s1279_s25, 1 }
  0x17   : > { %p68_p5 = scmp.eq.s32.totalorder %s884_s22, 0  ;;  %p73_p6 = scmp.ne.s32.totalorder %s860_s16, %s856_s15 }
  0x18   : > { %s1283_s26 = smov (%p47_p3, %s1281_s26), 0  ;;  %p74_p8 = scmp.eq.s32.totalorder %s525_s23, 0 }
  0x19   : > { %1253 = sst [smem:[#allocation18_spill]] %s1283_s26  ;;  %s55_s30 = ssub.s32 %s880_s21, %s1283_s26 }
  0x1a   : > { %s54_s29 = scalar_select %p53_p4, %s1279_s25, 1 }
  0x1b   : > { %p989_p7 = por %p68_p5, %p67_p2  ;;  %s118_s7 = ssub.s32 %s876_s20, %s1279_s25 }
  0x1c   : > { %s56_s5 = ssub.s32 %s978_s28, %s54_s29  ;;  %p998_p10 = por %p74_p8, %p73_p6 }
  0x1d   : > { %s57_s6 = sor.u32 %s56_s5, %s55_s30  ;;  %s119_s9 = sor.u32 %s118_s7, %s55_s30 }
  0x1e   : > { %p58_p9 = scmp.eq.s32.totalorder %s57_s6, 0  ;;  %s122_s10 = sadd.s32 1, %s852_s14 }
  0x1f   : > { %s1255_s8 = scalar_select %p998_p10, 1, 0 }
  0x20   : > { %s1004_s11 = scalar_select %p58_p9, %s864_s17, %s60_s27  }
  0x21   : > { %p120_p11 = scmp.eq.s32.totalorder %s119_s9, 0  ;;  %p132_p12 = scmp.ne.s32.totalorder %s852_s14, %s848_s13 }
  0x22   : > { %p133_p13 = scmp.eq.s32.totalorder %s525_s23, 3  ;;  %p138_p0 = scmp.ne.s32.totalorder %s848_s13, %s844_s12 }
  0x23   : > { %s1013_s15 = scalar_select %p120_p11, %s852_s14, %s122_s10  }
  0x24   : > { %p1015_p1 = por %p133_p13, %p132_p12  ;;  %p139_p2 = scmp.eq.s32.totalorder %s526_s24, 3 }
  0x25   : > { %p571_p3 = scmp.lt.s32.totalorder %s884_s22, 4  ;;  %s1027_s30 = sand.u32 1, %s864_s17  }
  0x26   : > { %s1256_s29 = scalar_select %p1015_p1, 1, 0 }
  0x27   : > { %p1022_p4 = por %p139_p2, %p138_p0  ;;  %s529_s23 = sshll.u32 %s1027_s30, 2 }
  0x28   : > { %s530_s5 = sshll.u32 %s880_s21, 1  ;;  %s191_s7 = scalar_lea.vmem [#allocation4], %s529_s23 }
  0x29   : > { %s1257_s27 = scalar_select %p1022_p4, 1, 0 }
  0x2a   : > { %s1032_s6 = sadd.s32 %s530_s5, %s978_s28  ;;  %s203_s9 = sshll.u32 %s191_s7, 4  ;;  %s1035_s9 = int_to_ptr.vmem [resolvable:$true] %s203_s9 }
  0x2b   : > { %s531_s10 = sshll.u32 %s1032_s6, 6  ;;  %s1258_s0 = sld [smem:[#allocation19_spill]] }
  0x2c   : > { %p1044_p5 = pnand %p571_p3, %p989_p7  ;;  %s188_s28 = scalar_lea.sflag [#allocation5], %s1027_s30 }
  0x2e   : > { %p668_p11 = pneg %p1044_p5 }
  0x31   : > { %s1040_s25 = scalar_lea.hbm %s1258_s0, %s531_s10  ;;  %s671_s5 = scalar_lea.hbm %s1258_s0, 256 }
  0x32   : > { %s666_s23 = scalar_lea.hbm %s1040_s25, 64  ;;  %p672_p7 = scmp.lt.u32.totalorder %s1040_s25, %s1258_s0 }
  0x33   : > { %p667_p9 = scmp.ne.s32.totalorder %s1040_s25, %s666_s23  ;;  %p673_p0 = scmp.lt.u32.totalorder %s671_s5, %s666_s23 }
  0x34   : > { %p675_p3 = scmp.lt.u32.totalorder %s666_s23, %s1040_s25 }
  0x35   : > { %p669_p12 = pnand %p668_p11, %p667_p9  ;;  %p674_p2 = por %p673_p0, %p672_p7 }
  0x37   : > { %p670_p13 = pneg %p669_p12  ;;  %p676_p6 = por %p675_p3, %p674_p2 }
  0x39   : > { %p677_p8 = pnand %p676_p6, %p670_p13 }
  0x3b   : > { %680 = shalt.err (!%p677_p8)
}
  0x3c   : > { %s681_s24 = scalar_lea.vmem %s1035_s9, 64  ;;  %s886_s26 = smov [#allocation4]  }
  0x3d   : > { %p682_p9 = scmp.ne.s32.totalorder %s1035_s9, %s681_s24  ;;  %s686_s4 = sshll.u32 %s886_s26, 4  ;;  %s687_s4 = int_to_ptr.vmem [resolvable:$false] %s686_s4 }
  0x3e   : > { %s688_s7 = scalar_lea.vmem %s687_s4, 128  ;;  %p689_p1 = scmp.lt.s32.totalorder %s1035_s9, %s687_s4 }
  0x3f   : > { %p684_p12 = pnand %p682_p9, %p668_p11  ;;  %p690_p7 = scmp.lt.s32.totalorder %s688_s7, %s681_s24 }
  0x41   : > { %p685_p4 = pneg %p684_p12  ;;  %p691_p0 = por %p690_p7, %p689_p1 }
  0x43   : > { %p692_p2 = pnand %p691_p0, %p685_p4 }
  0x45   : > { %695 = shalt.err (!%p692_p2)
}
  0x46   : > { %560 = dma.hbm_to_vmem [thread:$0]  (!%p1044_p5), %s1040_s25, 64, %s1035_s9, %s188_s28  }
  0x47   : > { %p1260_p6 = scmp.lt.s32.totalorder %s884_s22, 5  ;;  %p1261_p8 = scmp.ge.s32.totalorder %s884_s22, 1 }
  0x48   : > { %s533_s5 = sshll.u32 %s1032_s6, 4  ;;  %s213_s10 = scalar_lea.vmem [#allocation7], %s1027_s30 }
  0x49   : > { %p1080_p13 = pnand %p1261_p8, %p1260_p6  ;;  %s225_s24 = sshll.u32 %s213_s10, 4  ;;  %s226_s24 = int_to_ptr.vmem [resolvable:$true] %s225_s24 }
  0x4a   : > { %s1089_s7 = scalar_lea.hbm %s1242_s1, %s533_s5  ;;  %s211_s25 = scalar_lea.sflag [#allocation8], %s1027_s30 }
  0x4b   : > { %s1262_s23 = scalar_select %p1080_p13, 1, 0 }
  0x4c   : > { %s696_s9 = scalar_lea.hbm %s1089_s7, 16  ;;  %s701_s10 = scalar_lea.hbm %s1242_s1, 64 }
  0x4d   : > { %p697_p1 = scmp.ne.s32.totalorder %s1089_s7, %s696_s9  ;;  %p702_p9 = scmp.lt.u32.totalorder %s1089_s7, %s1242_s1 }
  0x4e   : > { %p703_p12 = scmp.lt.u32.totalorder %s701_s10, %s696_s9  ;;  %p705_p0 = scmp.lt.u32.totalorder %s696_s9, %s1089_s7 }
  0x4f   : > { %p699_p4 = pnand %p697_p1, %p668_p11 }
  0x50   : > { %p704_p7 = por %p703_p12, %p702_p9 }
  0x51   : > { %p700_p3 = pneg %p699_p4 }
  0x52   : > { %p706_p2 = por %p705_p0, %p704_p7 }
  0x54   : > { %p707_p6 = pnand %p706_p2, %p700_p3 }
  0x56   : > { %710 = shalt.err (!%p707_p6)
}
  0x57   : > { %s711_s30 = scalar_lea.vmem %s226_s24, 16  ;;  %s887_s5 = smov [#allocation7]  }
  0x58   : > { %p712_p8 = scmp.ne.s32.totalorder %s226_s24, %s711_s30  ;;  %s716_s4 = sshll.u32 %s887_s5, 4  ;;  %s717_s4 = int_to_ptr.vmem [resolvable:$false] %s716_s4 }
  0x59   : > { %s718_s6 = scalar_lea.vmem %s717_s4, 32  ;;  %p719_p10 = scmp.lt.s32.totalorder %s226_s24, %s717_s4 }
  0x5a   : > { %p714_p1 = pnand %p712_p8, %p668_p11  ;;  %p720_p13 = scmp.lt.s32.totalorder %s718_s6, %s711_s30 }
  0x5c   : > { %p715_p4 = pneg %p714_p1  ;;  %p721_p9 = por %p720_p13, %p719_p10 }
  0x5e   : > { %p722_p12 = pnand %p721_p9, %p715_p4 }
  0x60   : > { %725 = shalt.err (!%p722_p12)
}
  0x61   : > { %563 = dma.hbm_to_vmem [thread:$0]  (!%p1044_p5), %s1089_s7, 16, %s226_s24, %s211_s25  }
  0x62   : > { %p1263_p3 = scmp.ne.s32.totalorder %s1262_s23, 0 }
  0x63   : > { %s236_s0 = sand.u32 (!%p1263_p3), 1, %s860_s16   ;;  %p1264_p11 = scmp.ne.s32.totalorder (!%p1263_p3), %s1255_s8, 0 }
  0x64   : > { %234 = sbr.rel (%p1263_p3) target bundleno = 328 (0x148), region = 28  ;;  %s535_s9 = sshll.u32 (!%p1263_p3), %s236_s0, 2 }
  0x65   : > { %s237_s28 = scalar_lea.sflag (!%p1263_p3), [#allocation5], %s236_s0  ;;  %s240_s10 = scalar_lea.vmem (!%p1263_p3), [#allocation4], %s535_s9 }
  0x6b   : > { %827 = dma.done.wait (%p1264_p11), %s237_s28, 64  }
  0x6c   : > { %829 = vsyncadd (%p1264_p11), %s237_s28, 4294967232  ;;  %s246_s26 = scalar_lea.sflag [#allocation8], %s236_s0  ;;  %s248_s30 = scalar_lea.vmem [#allocation7], %s236_s0 }
  0x6d   : > { %831 = dma.done.wait (%p1264_p11), %s246_s26, 16  }
  0x6e   : > { %833 = vsyncadd (%p1264_p11), %s246_s26, 4294967280  ;;  %v888_v0 = vmov 0.0   ;;  %v296_v1 = vlaneseq  ;;  %v292_v2 = vld [vmem:[%s240_s10] sm:$0xf]  ;;  %s538_s21 = sshll.u32 %s868_s18, 7  ;;  %vm334_vm4 = vcmask 1043456  }
  0x6f   : > { %290 = vst [vmem:[#allocation2] sm:$0xf] %v888_v0  ;;  %291 = vst [vmem:[#allocation3] sm:$0xf] %v888_v0  ;;  %v539_v3 = vmul.f32 -1.442695, %v292_v2  ;;  %v298_v5 = vstv %s538_s21 }
  0x70   : > { %v297_v4 = vand.u32 127, %v296_v1  ;;  %v293_v7 = vld [vmem:[%s248_s30] sm:$0x1]  ;;  %v311_v8 = vshrl.u32 %v296_v1, 7  ;;  %s1126_s8 = sand.u32 1, %s848_s13   ;;  %s543_s23 = sshll.u32 %s872_s19, 1 }
  0x71   : > { %662 = vpow2.f32 %v539_v3  ;;  %vm301_vm1 = vcmp.ne.s32.totalorder %v293_v7, 255  ;;  %s536_s24 = sshll.u32 %s1126_s8, 2  ;;  %s1131_s7 = sadd.s32 %s868_s18, %s543_s23  ;;  %vm338_vm5 = vcmask 3072  }
  0x72   : > { %v299_v6 = vadd.s32 %v298_v5, %v297_v4  ;;  %v314_v11 = vsub.s32 0, %v311_v8  ;;  %s544_s25 = sshll.u32 %s1131_s7, 6  ;;  %s272_s5 = scalar_lea.vmem [#allocation9], %s536_s24 }
  0x73   : > { %s366_s4 = sshll.u32 %s272_s5, 4  ;;  %s1139_s9 = scalar_lea.hbm %s1243_s2, %s544_s25  ;;  %s1141_s4 = int_to_ptr.vmem [resolvable:$true] %s366_s4 }
  0x74   : > { %vm300_vm0 = vcmp.lt.s32.totalorder %v299_v6, 256  ;;  %s1143_s18 = scalar_lea.vmem [#allocation10], %s536_s24  ;;  %s346_s28 = scalar_lea.sflag [#allocation6], %s1126_s8 }
  0x75   : > { %vm302_vm2 = vmand %vm301_vm1, %vm300_vm0  ;;  %s381_s19 = sshll.u32 %s1143_s18, 4  ;;  %s726_s10 = scalar_lea.vmem %s1141_s4, 64  ;;  %s1178_s19 = int_to_ptr.vmem [resolvable:$true] %s381_s19 }
  0x76   : > { %v303_v12 = vsel %vm302_vm2, %v293_v7, 4294967295  ;;  %v317_v14 = vld [vmem:[#allocation2] sm:$0xf]  ;;  %v321_v18 = vld [vmem:[#allocation3] sm:$0xf]  ;;  %p727_p10 = scmp.ne.s32.totalorder %s1141_s4, %s726_s10  ;;  %p1265_p5 = scmp.ne.s32.totalorder %s1256_s29, 0 }
  0x77   : > { %v315_v13 = vrot.slane %v303_v12, %v314_v11  ;;  %s889_s26 = smov [#allocation9]  }
  0x78   : > { %p728_p13 = pnand %p727_p10, %p1265_p5  ;;  %s730_s30 = sshll.u32 %s889_s26, 4  ;;  %s731_s30 = int_to_ptr.vmem [resolvable:$false] %s730_s30 }
  0x79   : > { %vm316_vm3 = vcmp.eq.s32.totalorder %v311_v8, %v315_v13  ;;  %s732_s21 = scalar_lea.vmem %s731_s30, 128  ;;  %p733_p0 = scmp.lt.s32.totalorder %s1141_s4, %s731_s30 }
  0x7a   : > { %v540_v15 = vsel %vm316_vm3, 1.0, %v888_v0  ;;  %p729_p7 = pneg %p728_p13  ;;  %p734_p2 = scmp.lt.s32.totalorder %s732_s21, %s726_s10 }
  0x7b   : > { %v663_v9 = vpop.eup %662 }
  0x7c   : > { %v307_v10 = vadd.f32 1.0, %v663_v9  ;;  %p735_p6 = por %p734_p2, %p733_p0 }
  0x7e   : > { %664 = vrcp.f32 %v307_v10  ;;  %p736_p8 = pnand %p735_p6, %p729_p7 }
  0x88   : > { %v665_v16 = vpop.eup %664 }
  0x89   : > { %v318_v17 = vsel %vm316_vm3, %v665_v16, 0.0  ;;  %v324_v19 = vsel %vm300_vm0, %v665_v16, 0.0 }
  0x8a   : > { %v319_v20 = vadd.f32 %v318_v17, %v317_v14  ;;  %v327_v21 = vadd.f32 %v540_v15, %v324_v19 }
  0x8c   : > { %320 = vst [vmem:[#allocation2] sm:$0xf] %v319_v20  ;;  %v328_v22 = vadd.f32 %v327_v21, %v321_v18 }
  0x8e   : > { %329 = vst [vmem:[#allocation3] sm:$0xf] %v328_v22 }
  0x93   : > { %v333_v23 = vld [vmem:[#allocation2] sm:$0xf] }
  0x94   : > { %v335_v24 = vsel %vm334_vm4, %v333_v23, 0.0 }
  0x95   : > { %336 = vadd.xlane.f32.xlu0 %v335_v24  ;;  %v340_v25 = vld [vmem:[#allocation3] sm:$0xf] }
  0x96   : > { %v341_v26 = vsel %vm334_vm4, %v340_v25, 0.0 }
  0x99   : > { %342 = vadd.xlane.f32.xlu0 %v341_v26 }
 0x122   : > { %v337_v27 = vpop.xlane.xlu0 %336 }
 0x123   : > { %339 = vst.msk [vmem:[%s272_s5] sm:$0xf] %vm338_vm5, %v337_v27 }
 0x124   : > { %739 = shalt.err (!%p736_p8)
}
 0x125   : > { %s740_s23 = scalar_lea.hbm %s1139_s9, 64  ;;  %s744_s6 = scalar_lea.hbm %s1243_s2, 256 }
 0x126   : > { %p741_p1 = scmp.ne.s32.totalorder %s1139_s9, %s740_s23  ;;  %p745_p12 = scmp.lt.u32.totalorder %s1139_s9, %s1243_s2 }
 0x127   : > { %p746_p3 = scmp.lt.u32.totalorder %s744_s6, %s740_s23  ;;  %p748_p10 = scmp.lt.u32.totalorder %s740_s23, %s1139_s9 }
 0x128   : > { %p742_p4 = pnand %p741_p1, %p1265_p5 }
 0x129   : > { %p747_p11 = por %p746_p3, %p745_p12 }
 0x12a   : > { %p743_p9 = pneg %p742_p4 }
 0x12b   : > { %p749_p13 = por %p748_p10, %p747_p11 }
 0x12d   : > { %p750_p7 = pnand %p749_p13, %p743_p9 }
 0x12f   : > { %753 = shalt.err (!%p750_p7)
}
 0x130   : > { %553 = dma.vmem_to_hbm [thread:$0]  (%p1265_p5), %s1141_s4, 64, %s1139_s9, %s346_s28   ;;  %v343_v28 = vpop.xlane.xlu0 %342 }
 0x131   : > { %s1174_s21 = scalar_lea.hbm %s1244_s3, %s544_s25  ;;  %344 = vst.msk [vmem:[%s1143_s18] sm:$0xf] %vm338_vm5, %v343_v28  ;;  %s351_s23 = scalar_lea.sflag [#allocation11], %s1126_s8 }
 0x132   : > { %s754_s24 = scalar_lea.vmem %s1178_s19, 64  ;;  %s890_s7 = smov [#allocation10]  }
 0x133   : > { %p755_p0 = scmp.ne.s32.totalorder %s1178_s19, %s754_s24  ;;  %s758_s4 = sshll.u32 %s890_s7, 4  ;;  %s759_s4 = int_to_ptr.vmem [resolvable:$false] %s758_s4 }
 0x134   : > { %s760_s25 = scalar_lea.vmem %s759_s4, 128  ;;  %p761_p8 = scmp.lt.s32.totalorder %s1178_s19, %s759_s4 }
 0x135   : > { %p756_p2 = pnand %p755_p0, %p1265_p5  ;;  %p762_p1 = scmp.lt.s32.totalorder %s760_s25, %s754_s24 }
 0x137   : > { %p757_p6 = pneg %p756_p2  ;;  %p763_p4 = por %p762_p1, %p761_p8 }
 0x139   : > { %p764_p9 = pnand %p763_p4, %p757_p6 }
 0x13b   : > { %767 = shalt.err (!%p764_p9)
}
 0x13c   : > { %s768_s8 = scalar_lea.hbm %s1174_s21, 64  ;;  %s772_s28 = scalar_lea.hbm %s1244_s3, 256 }
 0x13d   : > { %p769_p12 = scmp.ne.s32.totalorder %s1174_s21, %s768_s8  ;;  %p773_p10 = scmp.lt.u32.totalorder %s1174_s21, %s1244_s3 }
 0x13e   : > { %p774_p13 = scmp.lt.u32.totalorder %s772_s28, %s768_s8  ;;  %p776_p0 = scmp.lt.u32.totalorder %s768_s8, %s1174_s21 }
 0x13f   : > { %p770_p3 = pnand %p769_p12, %p1265_p5 }
 0x140   : > { %p775_p7 = por %p774_p13, %p773_p10 }
 0x141   : > { %p771_p11 = pneg %p770_p3 }
 0x142   : > { %p777_p2 = por %p776_p0, %p775_p7 }
 0x144   : > { %p778_p6 = pnand %p777_p2, %p771_p11 }
 0x146   : > { %781 = shalt.err (!%p778_p6)
}
 0x147   : > { %554 = dma.vmem_to_hbm [thread:$0]  (%p1265_p5), %s1178_s19, 64, %s1174_s21, %s351_s23  }
 0x148 PF: > { %p572_p8 = scmp.ge.s32.totalorder %s884_s22, 2  ;;  %s393_s0 = sand.u32 1, %s844_s12  }
 0x149   : > { %p1266_p1 = scmp.ne.s32.totalorder %s1257_s27, 0  ;;  %s394_s26 = scalar_lea.sflag [#allocation6], %s393_s0 }
 0x14b   : > { %p565_p4 = pnand %p572_p8, %p1266_p1 }
 0x14d   : > { %835 = dma.done.wait (!%p565_p4), %s394_s26, 64  }
 0x14e   : > { %837 = vsyncadd (!%p565_p4), %s394_s26, 4294967232  ;;  %s403_s10 = scalar_lea.sflag [#allocation11], %s393_s0 }
 0x14f   : > { %839 = dma.done.wait (!%p565_p4), %s403_s10, 64  }
 0x150   : > { %841 = vsyncadd (!%p565_p4), %s403_s10, 4294967232  ;;  %s26_s22 = sadd.s32 1, %s884_s22   ;;  %s1267_s19 = sld [smem:[#allocation16_spill]] }
 0x151   : > { %p23_p9 = scmp.ge.s32.totalorder %s26_s22, 6   ;;  %s1268_s29 = sld [smem:[#allocation17_spill]] }
 0x152   : > { %s1269_s21 = sld [smem:[#allocation18_spill]]  ;;  %s1270_s12 = smov %s848_s13 }
 0x153   : > { %s1271_s13 = smov %s852_s14  ;;  %s1272_s14 = smov %s1013_s15 }
 0x154   : > { %s1273_s15 = smov %s860_s16  ;;  %s1274_s16 = smov %s864_s17 }
 0x155   : > { %s1275_s17 = smov %s1004_s11  ;;  %s1276_s18 = smov %s876_s20 }
 0x156   :  { %25 = sbr.rel (!%p23_p9) target bundleno = 15 (0xf), region = 111 }
 0x157   : > { %s1277_s20 = smov %s1268_s29 }
 0x15d   :  { %408 = vsyncpa [#allocation5], 1 }
 0x15e   :  { %410 = vsyncpa [#allocation5 + $0x1], 1 }
 0x15f   :  { %411 = vsyncpa [#allocation8], 1 }
 0x160   :  { %413 = vsyncpa [#allocation8 + $0x1], 1 }
 0x161   :  { %414 = vsyncpa [#allocation6], 1 }
 0x162   :  { %416 = vsyncpa [#allocation6 + $0x1], 1 }
 0x163   :  { %417 = vsyncpa [#allocation11], 1 }
 0x164   :  { %419 = vsyncpa [#allocation11 + $0x1], 1 }

</bundles_post_ra>
